<compile_context>
chip_gen: v5e
topology: v5e:2x2
jax: 0.10.0
libtpu: 0.0.40
codegen_flags: <defaults>
</compile_context>

<pallas_src>
import functools

import jax
import jax.numpy as jnp
from jax.experimental import pallas as pl
from jax.experimental.pallas import tpu as pltpu


LANE = 128
SUBLANE = 8
MAX_TILE = 1024


def _round_up(n, m):
    return ((n + m - 1) // m) * m


def _cdiv(a, b):
    return (a + b - 1) // b


# ----------------------------------------------------------------------------
# Kernel (handles both stochastic and deterministic heads via a static flag)
# ----------------------------------------------------------------------------
def _actor_kernel(x_ref, w1_ref, w2_ref, wh_ref, b1_ref, b2_ref, bh_ref,
                  out_ref, *, stochastic, act, max_range, max_std, min_std):
    """Fused 2-layer ReLU MLP + head(s) for one batch tile.

    x_ref   : (TB, OBS)
    w1_ref  : (OBS, HID_P)       w2_ref : (HID_P, LAST_P)
    wh_ref  : (LAST_P, HEAD_P)   fused + lane-padded head weight
    b*_ref  : (1, *) lane-dense bias rows
    out_ref : (TB, HEAD_P)       lane-dense output slab
    """
    # net(x): 2-layer ReLU MLP
    h = jnp.dot(x_ref[...], w1_ref[...], preferred_element_type=jnp.float32)
    h = jnp.maximum(h + b1_ref[...], 0.0)
    feat = jnp.dot(h, w2_ref[...], preferred_element_type=jnp.float32)
    feat = jnp.maximum(feat + b2_ref[...], 0.0)

    # single fused head matmul (mu||std for stochastic, out for deterministic)
    z = jnp.dot(feat, wh_ref[...], preferred_element_type=jnp.float32) + bh_ref[...]

    if stochastic:
        # cols [0, act)     -> mu (identity)
        # cols [act, 2*act) -> std = sigmoid(.) * max_std + min_std
        # cols >= 2*act     -> padding, discarded on host
        col = jax.lax.broadcasted_iota(jnp.int32, z.shape, 1)
        std = jax.nn.sigmoid(z) * max_std + min_std
        out_ref[...] = jnp.where(col >= act, std, z)
    else:
        # padded cols give tanh(0)*max_range = 0, discarded on host
        out_ref[...] = jnp.tanh(z) * max_range


# ----------------------------------------------------------------------------
# Wrapper
# ----------------------------------------------------------------------------
ALGO_STOCHASTIC = {"VPG": True, "A2C": True, "DDPG": False,
                   "TD3": False, "SAC": True, "NPG": True}


def actor_forward(algo_name, x, params, *, max_range, min_std=0.01, max_std=1.0):
    """Pallas equivalent of Actor.forward(x)."""
    if algo_name not in ALGO_STOCHASTIC:
        raise KeyError(algo_name)
    stochastic = ALGO_STOCHASTIC[algo_name]

    w1, b1, w2, b2 = params["w1"], params["b1"], params["w2"], params["b2"]
    obs, hid = w1.shape
    last = w2.shape[1]

    # --- fuse head weights / biases host-side ---
    if stochastic:
        wmu, bmu, wstd, bstd = (params["wmu"], params["bmu"],
                                params["wstd"], params["bstd"])
        act = wmu.shape[1]
        w_head = jnp.concatenate([wmu, wstd], axis=1)   # (LAST, 2*ACT)
        b_head = jnp.concatenate([bmu.reshape(1, -1), bstd.reshape(1, -1)], axis=1)
        head_used = 2 * act
    else:
        wout, bout = params["wout"], params["bout"]
        act = wout.shape[1]
        w_head, b_head = wout, bout.reshape(1, -1)
        head_used = act

    # --- pad every feature dim to a 128-lane multiple (lane-dense everywhere).
    # Zero padding is exact: padded hidden units are relu(0)=0 and feed
    # zero-padded weight rows downstream; padded head lanes are discarded.
    hid_p = _round_up(hid, LANE)
    last_p = _round_up(last, LANE)
    head_p = max(_round_up(head_used, LANE), LANE)

    f32 = jnp.float32
    w1p = jnp.pad(w1.astype(f32), ((0, 0), (0, hid_p - hid)))
    b1p = jnp.pad(b1.astype(f32).reshape(1, -1), ((0, 0), (0, hid_p - hid)))
    w2p = jnp.pad(w2.astype(f32), ((0, hid_p - hid), (0, last_p - last)))
    b2p = jnp.pad(b2.astype(f32).reshape(1, -1), ((0, 0), (0, last_p - last)))
    whp = jnp.pad(w_head.astype(f32),
                  ((0, last_p - last), (0, head_p - head_used)))
    bhp = jnp.pad(b_head.astype(f32), ((0, 0), (0, head_p - head_used)))

    # --- batch tiling: no host-side pad of x; Pallas handles the ragged last
    # block (padded reads, masked writes).  Big tiles amortize per-step
    # overhead; >=2 tiles once the batch is big enough so both v7x TCs work.
    B = x.shape[0]
    bp8 = _round_up(max(B, 1), SUBLANE)
    if bp8 <= 256:
        tb = bp8                                    # one tile, one step
    elif bp8 <= 2 * MAX_TILE:
        tb = _round_up(_cdiv(bp8, 2), SUBLANE)      # exactly 2 balanced tiles
    else:
        tb = MAX_TILE
    grid = (_cdiv(B, tb),)

    kern = functools.partial(
        _actor_kernel, stochastic=stochastic, act=act,
        max_range=float(max_range), max_std=float(max_std),
        min_std=float(min_std))

    flops = 2 * B * (obs * hid_p + hid_p * last_p + last_p * head_p)
    bytes_accessed = 4 * (B * obs + obs * hid_p + hid_p * last_p
                          + last_p * head_p + hid_p + last_p + head_p
                          + B * head_p)

    out = pl.pallas_call(
        kern,
        out_shape=jax.ShapeDtypeStruct((B, head_p), jnp.float32),
        grid=grid,
        in_specs=[
            pl.BlockSpec((tb, obs), lambda i: (i, 0)),           # x tile (moving)
            pl.BlockSpec((obs, hid_p), lambda i: (0, 0)),        # w1   (resident)
            pl.BlockSpec((hid_p, last_p), lambda i: (0, 0)),     # w2   (resident)
            pl.BlockSpec((last_p, head_p), lambda i: (0, 0)),    # head (resident)
            pl.BlockSpec((1, hid_p), lambda i: (0, 0)),          # b1   (resident)
            pl.BlockSpec((1, last_p), lambda i: (0, 0)),         # b2   (resident)
            pl.BlockSpec((1, head_p), lambda i: (0, 0)),         # bh   (resident)
        ],
        out_specs=pl.BlockSpec((tb, head_p), lambda i: (i, 0)),
        compiler_params=pltpu.CompilerParams(
            dimension_semantics=("parallel",)),                  # v7x: 2 TCs
        cost_estimate=pl.CostEstimate(
            flops=flops, transcendentals=B * head_p,
            bytes_accessed=bytes_accessed),
    )(x, w1p, w2p, whp, b1p, b2p, bhp)

    if stochastic:
        return out[:, :act], out[:, act:2 * act]
    return out[:, :act], None


# ----------------------------------------------------------------------------
# Pure-JAX reference (for correctness check)
# ----------------------------------------------------------------------------
def actor_forward_ref(algo_name, x, params, *, max_range, min_std=0.01, max_std=1.0):
    h = jnp.maximum(x @ params["w1"] + params["b1"], 0.0)
    feat = jnp.maximum(h @ params["w2"] + params["b2"], 0.0)
    if ALGO_STOCHASTIC[algo_name]:
        mu = feat @ params["wmu"] + params["bmu"]
        std = jax.nn.sigmoid(feat @ params["wstd"] + params["bstd"]) * max_std + min_std
        return mu, std
    out = feat @ params["wout"] + params["bout"]
    return jnp.tanh(out) * max_range, None


# ----------------------------------------------------------------------------
# Main
# ----------------------------------------------------------------------------
if __name__ == "__main__":
    # Small shapes consistent with the module:
    B, OBS, HID, LAST, ACT = 8, 32, 64, 64, 16
    B_BIG = 300                     # exercises multi-tile grid + ragged block
    MAX_RANGE, MIN_STD, MAX_STD = 2.0, 0.01, 1.0

    key = jax.random.PRNGKey(0)
    keys = jax.random.split(key, 12)

    def init(k, shape, scale):
        return jax.random.uniform(k, shape, jnp.float32, -1.0, 1.0) * scale

    params = {
        # net_architecture: 2-layer ReLU MLP, weights stored (in, out)
        "w1": init(keys[0], (OBS, HID), 1.0 / jnp.sqrt(OBS)),
        "b1": init(keys[1], (1, HID), 1.0 / jnp.sqrt(OBS)),
        "w2": init(keys[2], (HID, LAST), 1.0 / jnp.sqrt(HID)),
        "b2": init(keys[3], (1, LAST), 1.0 / jnp.sqrt(HID)),
        # stochastic heads (SAC/VPG/A2C/NPG)
        "wmu": init(keys[4], (LAST, ACT), 1.0 / jnp.sqrt(LAST)),
        "bmu": init(keys[5], (1, ACT), 1.0 / jnp.sqrt(LAST)),
        "wstd": init(keys[6], (LAST, ACT), 1.0 / jnp.sqrt(LAST)),
        "bstd": init(keys[7], (1, ACT), 1.0 / jnp.sqrt(LAST)),
        # deterministic head (DDPG/TD3)
        "wout": init(keys[8], (LAST, ACT), 1.0 / jnp.sqrt(LAST)),
        "bout": init(keys[9], (1, ACT), 1.0 / jnp.sqrt(LAST)),
    }

    x = jax.random.normal(keys[10], (B, OBS), jnp.float32)
    x_big = jax.random.normal(keys[11], (B_BIG, OBS), jnp.float32)

    # Stochastic branch (SAC): returns (mu, std)
    mu, std = actor_forward("SAC", x, params,
                            max_range=MAX_RANGE, min_std=MIN_STD, max_std=MAX_STD)
    jax.block_until_ready((mu, std))
    mu_ref, std_ref = actor_forward_ref("SAC", x, params,
                                        max_range=MAX_RANGE, min_std=MIN_STD,
                                        max_std=MAX_STD)
    assert mu.shape == (B, ACT) and std.shape == (B, ACT)
    assert jnp.allclose(mu, mu_ref, atol=1e-4, rtol=1e-4)
    assert jnp.allclose(std, std_ref, atol=1e-4, rtol=1e-4)

    # Deterministic branch (DDPG): returns (actions, None)
    actions, none_std = actor_forward("DDPG", x, params,
                                      max_range=MAX_RANGE, min_std=MIN_STD,
                                      max_std=MAX_STD)
    jax.block_until_ready(actions)
    act_ref, _ = actor_forward_ref("DDPG", x, params,
                                   max_range=MAX_RANGE, min_std=MIN_STD,
                                   max_std=MAX_STD)
    assert none_std is None
    assert actions.shape == (B, ACT)
    assert jnp.allclose(actions, act_ref, atol=1e-4, rtol=1e-4)

    # Larger, non-multiple-of-8 batch: multi-tile "parallel" grid + ragged
    # last block handled by Pallas (no host-side padding copies).
    mu_b, std_b = actor_forward("SAC", x_big, params,
                                max_range=MAX_RANGE, min_std=MIN_STD,
                                max_std=MAX_STD)
    jax.block_until_ready((mu_b, std_b))
    mu_b_ref, std_b_ref = actor_forward_ref("SAC", x_big, params,
                                            max_range=MAX_RANGE, min_std=MIN_STD,
                                            max_std=MAX_STD)
    assert mu_b.shape == (B_BIG, ACT) and std_b.shape == (B_BIG, ACT)
    assert jnp.allclose(mu_b, mu_b_ref, atol=1e-4, rtol=1e-4)
    assert jnp.allclose(std_b, std_b_ref, atol=1e-4, rtol=1e-4)

    # TODO(synk): Actor.sample() uses Normal.rsample / log_prob (host-side
    # distributions API); it can be layered on top of this kernel with
    # pltpu.prng_random_bits but is outside the forward-pass scope here.

    print("KERNEL_OK")
</pallas_src>

<mosaic_0001>
module attributes {stable_mosaic.version = 11 : i64} {
  func.func @_actor_kernel(%arg0: i32, %arg1: memref<8x32xf32, #tpu.memory_space<vmem>>, %arg2: memref<32x128xf32, #tpu.memory_space<vmem>>, %arg3: memref<128x128xf32, #tpu.memory_space<vmem>>, %arg4: memref<128x128xf32, #tpu.memory_space<vmem>>, %arg5: memref<1x128xf32, #tpu.memory_space<vmem>>, %arg6: memref<1x128xf32, #tpu.memory_space<vmem>>, %arg7: memref<1x128xf32, #tpu.memory_space<vmem>>, %arg8: memref<8x128xf32, #tpu.memory_space<vmem>>) attributes {dimension_semantics = [#tpu.dimension_semantics<parallel>], iteration_bounds = array<i64: 1>, scalar_prefetch = 0 : i64, scratch_operands = 0 : i64, tpu.core_type = #tpu.core_type<tc>, window_params = [{transform_indices = @transform_0, window_bounds = array<i64: 8, 32>}, {pipeline_mode = #tpu.pipeline_mode<synchronous>, transform_indices = @transform_1, window_bounds = array<i64: 32, 128>}, {pipeline_mode = #tpu.pipeline_mode<synchronous>, transform_indices = @transform_2, window_bounds = array<i64: 128, 128>}, {pipeline_mode = #tpu.pipeline_mode<synchronous>, transform_indices = @transform_3, window_bounds = array<i64: 128, 128>}, {pipeline_mode = #tpu.pipeline_mode<synchronous>, transform_indices = @transform_4, window_bounds = array<i64: 1, 128>}, {pipeline_mode = #tpu.pipeline_mode<synchronous>, transform_indices = @transform_5, window_bounds = array<i64: 1, 128>}, {pipeline_mode = #tpu.pipeline_mode<synchronous>, transform_indices = @transform_6, window_bounds = array<i64: 1, 128>}, {transform_indices = @transform_7, window_bounds = array<i64: 8, 128>}]} {
    %c0 = arith.constant 0 : index
    %c0_0 = arith.constant 0 : index
    %0 = vector.load %arg1[%c0, %c0_0] : memref<8x32xf32, #tpu.memory_space<vmem>>, vector<8x32xf32>
    %c0_1 = arith.constant 0 : index
    %c0_2 = arith.constant 0 : index
    %1 = vector.load %arg2[%c0_1, %c0_2] : memref<32x128xf32, #tpu.memory_space<vmem>>, vector<32x128xf32>
    %cst = arith.constant dense<0.000000e+00> : vector<8x128xf32>
    %2 = tpu.matmul %0, %1, %cst {dimension_numbers = #tpu.dot_dimension_numbers<[1], [0], [0], [1], [0, 0, 1, 1], [], []>} : vector<8x32xf32>, vector<32x128xf32>, vector<8x128xf32> -> vector<8x128xf32>
    %c0_3 = arith.constant 0 : index
    %c0_4 = arith.constant 0 : index
    %3 = vector.load %arg5[%c0_3, %c0_4] : memref<1x128xf32, #tpu.memory_space<vmem>>, vector<1x128xf32>
    %4 = vector.broadcast %3 : vector<1x128xf32> to vector<8x128xf32>
    %5 = arith.addf %2, %4 : vector<8x128xf32>
    %cst_5 = arith.constant 0.000000e+00 : f32
    %6 = vector.broadcast %cst_5 : f32 to vector<8x128xf32>
    %7 = arith.maximumf %5, %6 : vector<8x128xf32>
    %c0_6 = arith.constant 0 : index
    %c0_7 = arith.constant 0 : index
    %8 = vector.load %arg3[%c0_6, %c0_7] : memref<128x128xf32, #tpu.memory_space<vmem>>, vector<128x128xf32>
    %cst_8 = arith.constant dense<0.000000e+00> : vector<8x128xf32>
    %9 = tpu.matmul %7, %8, %cst_8 {dimension_numbers = #tpu.dot_dimension_numbers<[1], [0], [0], [1], [0, 0, 1, 1], [], []>} : vector<8x128xf32>, vector<128x128xf32>, vector<8x128xf32> -> vector<8x128xf32>
    %c0_9 = arith.constant 0 : index
    %c0_10 = arith.constant 0 : index
    %10 = vector.load %arg6[%c0_9, %c0_10] : memref<1x128xf32, #tpu.memory_space<vmem>>, vector<1x128xf32>
    %11 = vector.broadcast %10 : vector<1x128xf32> to vector<8x128xf32>
    %12 = arith.addf %9, %11 : vector<8x128xf32>
    %cst_11 = arith.constant 0.000000e+00 : f32
    %13 = vector.broadcast %cst_11 : f32 to vector<8x128xf32>
    %14 = arith.maximumf %12, %13 : vector<8x128xf32>
    %c0_12 = arith.constant 0 : index
    %c0_13 = arith.constant 0 : index
    %15 = vector.load %arg4[%c0_12, %c0_13] : memref<128x128xf32, #tpu.memory_space<vmem>>, vector<128x128xf32>
    %cst_14 = arith.constant dense<0.000000e+00> : vector<8x128xf32>
    %16 = tpu.matmul %14, %15, %cst_14 {dimension_numbers = #tpu.dot_dimension_numbers<[1], [0], [0], [1], [0, 0, 1, 1], [], []>} : vector<8x128xf32>, vector<128x128xf32>, vector<8x128xf32> -> vector<8x128xf32>
    %c0_15 = arith.constant 0 : index
    %c0_16 = arith.constant 0 : index
    %17 = vector.load %arg7[%c0_15, %c0_16] : memref<1x128xf32, #tpu.memory_space<vmem>>, vector<1x128xf32>
    %18 = vector.broadcast %17 : vector<1x128xf32> to vector<8x128xf32>
    %19 = arith.addf %16, %18 : vector<8x128xf32>
    %20 = tpu.iota {dimensions = array<i32: 1>} : vector<8x128xi32>
    %21 = arith.negf %19 : vector<8x128xf32>
    %22 = math.exp %21 : vector<8x128xf32>
    %cst_17 = arith.constant 1.000000e+00 : f32
    %23 = vector.broadcast %cst_17 : f32 to vector<8x128xf32>
    %24 = arith.addf %23, %22 : vector<8x128xf32>
    %25 = arith.divf %23, %24 : vector<8x128xf32>
    %cst_18 = arith.constant 1.000000e+00 : f32
    %26 = vector.broadcast %cst_18 : f32 to vector<8x128xf32>
    %27 = arith.mulf %25, %26 : vector<8x128xf32>
    %cst_19 = arith.constant 0.00999999977 : f32
    %28 = vector.broadcast %cst_19 : f32 to vector<8x128xf32>
    %29 = arith.addf %27, %28 : vector<8x128xf32>
    %c16_i32 = arith.constant 16 : i32
    %30 = vector.broadcast %c16_i32 : i32 to vector<8x128xi32>
    %31 = arith.cmpi sge, %20, %30 : vector<8x128xi32>
    %32 = arith.select %31, %29, %19 : vector<8x128xi1>, vector<8x128xf32>
    %c0_20 = arith.constant 0 : index
    %c0_21 = arith.constant 0 : index
    %33 = vector.load %arg8[%c0_20, %c0_21] : memref<8x128xf32, #tpu.memory_space<vmem>>, vector<8x128xf32>
    tpu.vector_store %arg8[%c0_20, %c0_21], %32 {strides = array<i32>} : memref<8x128xf32, #tpu.memory_space<vmem>>, vector<8x128xf32>,
    return
  }
  func.func @transform_0(%arg0: i32) -> (i32, i32) {
    %c0_i32 = arith.constant 0 : i32
    %c0_i32_0 = arith.constant 0 : i32
    return %arg0, %c0_i32 : i32, i32
  }
  func.func @transform_1(%arg0: i32) -> (i32, i32) {
    %c0_i32 = arith.constant 0 : i32
    %c0_i32_0 = arith.constant 0 : i32
    %c0_i32_1 = arith.constant 0 : i32
    return %c0_i32, %c0_i32_0 : i32, i32
  }
  func.func @transform_2(%arg0: i32) -> (i32, i32) {
    %c0_i32 = arith.constant 0 : i32
    %c0_i32_0 = arith.constant 0 : i32
    %c0_i32_1 = arith.constant 0 : i32
    return %c0_i32, %c0_i32_0 : i32, i32
  }
  func.func @transform_3(%arg0: i32) -> (i32, i32) {
    %c0_i32 = arith.constant 0 : i32
    %c0_i32_0 = arith.constant 0 : i32
    %c0_i32_1 = arith.constant 0 : i32
    return %c0_i32, %c0_i32_0 : i32, i32
  }
  func.func @transform_4(%arg0: i32) -> (i32, i32) {
    %c0_i32 = arith.constant 0 : i32
    %c0_i32_0 = arith.constant 0 : i32
    %c0_i32_1 = arith.constant 0 : i32
    return %c0_i32, %c0_i32_0 : i32, i32
  }
  func.func @transform_5(%arg0: i32) -> (i32, i32) {
    %c0_i32 = arith.constant 0 : i32
    %c0_i32_0 = arith.constant 0 : i32
    %c0_i32_1 = arith.constant 0 : i32
    return %c0_i32, %c0_i32_0 : i32, i32
  }
  func.func @transform_6(%arg0: i32) -> (i32, i32) {
    %c0_i32 = arith.constant 0 : i32
    %c0_i32_0 = arith.constant 0 : i32
    %c0_i32_1 = arith.constant 0 : i32
    return %c0_i32, %c0_i32_0 : i32, i32
  }
  func.func @transform_7(%arg0: i32) -> (i32, i32) {
    %c0_i32 = arith.constant 0 : i32
    %c0_i32_0 = arith.constant 0 : i32
    return %arg0, %c0_i32 : i32, i32
  }
}

</mosaic_0001>

<bundles_post_ra>
// kernel: tpu_custom_call.1
= control target key start
LH: loop header
LB: loop body
LE: loop exit
PB: predicated region body
PF: predicated region fallthrough
CT: control target
= control target key end

     0   :  { %12 = vsyncpa [#allocation3], 0  ;;  %s462_s0 = inlined_call_operand.hbm [shape: f32[8,32], index: 0, kind: input, shape index: {}]   ;;  %s463_s1 = inlined_call_operand.hbm [shape: f32[32,128], index: 1, kind: input, shape index: {}]   ;;  %s464_s2 = inlined_call_operand.hbm [shape: f32[128,128], index: 2, kind: input, shape index: {}]   ;;  %s465_s3 = inlined_call_operand.hbm [shape: f32[128,128], index: 3, kind: input, shape index: {}]   ;;  %s466_s4 = inlined_call_operand.vmem [shape: f32[1,128], index: 4, kind: input, shape index: {}]   ;;  %s467_s5 = inlined_call_operand.vmem [shape: f32[1,128], index: 5, kind: input, shape index: {}]   ;;  %s468_s6 = inlined_call_operand.vmem [shape: f32[1,128], index: 6, kind: input, shape index: {}]   ;;  %s469_s7 = inlined_call_operand.hbm [shape: f32[8,128], index: 7, kind: output, shape index: {}]  }
   0x1   :  { %13 = vsyncpa [#allocation6], 0 }
   0x2   :  { %14 = vsyncpa [#allocation9], 0  ;;  %s31_s26 = sshll.u32 %s463_s1, 4  ;;  %s32_s26 = int_to_ptr.hbm [resolvable:$true] %s31_s26 }
   0x3   :  { %15 = vsyncpa [#allocation4], 0  ;;  %s391_s27 = smov [#allocation5]   ;;  %s21_s8 = sshll.u32 %s462_s0, 4  ;;  %s22_s8 = int_to_ptr.hbm [resolvable:$true] %s21_s8 }
   0x4   :  { %s33_s28 = sshll.u32 %s391_s27, 4  ;;  %s392_s9 = smov 128   ;;  %s34_s28 = int_to_ptr.vmem [resolvable:$true] %s33_s28 }
   0x5   :  { %s393_s10 = smov 8   ;;  %s394_s11 = smov [#allocation2]  }
   0x6   :  { %39 = dma.hbm_to_vmem [thread:$0]  %s32_s26, 512, %s34_s28, [#allocation6], %s392_s9, %s392_s9, %s393_s10  }
   0x7   :  { %s23_s12 = sshll.u32 %s394_s11, 4  ;;  %s44_s15 = sshll.u32 %s464_s2, 4  ;;  %s24_s12 = int_to_ptr.vmem [resolvable:$true] %s23_s12  ;;  %s45_s15 = int_to_ptr.hbm [resolvable:$true] %s44_s15 }
   0x8   :  { %26 = dma.hbm_to_vmem [thread:$0]  %s22_s8, 128, %s24_s12, [#allocation3]  }
   0x9   :  { %s57_s17 = sshll.u32 %s465_s3, 4  ;;  %s395_s18 = smov [#allocation7]   ;;  %s58_s17 = int_to_ptr.hbm [resolvable:$true] %s57_s17 }
   0xa   :  { %s46_s19 = sshll.u32 %s395_s18, 4  ;;  %s396_s0 = smov [#allocation8]   ;;  %s47_s19 = int_to_ptr.vmem [resolvable:$true] %s46_s19 }
   0xb   :  { %52 = dma.hbm_to_vmem [thread:$0]  %s45_s15, 2048, %s47_s19, [#allocation6], %s392_s9, %s392_s9, %s393_s10  }
   0xc   :  { %s59_s20 = sshll.u32 %s396_s0, 4  ;;  %s60_s20 = int_to_ptr.vmem [resolvable:$true] %s59_s20 }
   0xd   :  { %65 = dma.hbm_to_vmem [thread:$0]  %s58_s17, 2048, %s60_s20, [#allocation9], %s392_s9, %s392_s9, %s393_s10  }
   0xe   :  { %383 = dma.done.wait [#allocation3], 128  }
   0xf   :  { %384 = vsyncadd [#allocation3], 4294967168 }
  0x10   :  { %385 = dma.done.wait [#allocation6], 2560  }
  0x11   :  { %386 = vsyncadd [#allocation6], 4294964736 }
  0x12   :  { %387 = dma.done.wait [#allocation9], 2048  }
  0x13   :  { %388 = vsyncadd [#allocation9], 4294965248  ;;  %v92_v0 = vld [vmem:[#allocation5 + $0x18] sm:$0xff]  ;;  %v91_v1 = vld [vmem:[#allocation5 + $0x10] sm:$0xff]  ;;  %vm97_vm0 = vcmask 261120   ;;  %v203_v53 = vlaneseq  ;;  %s235_s26 = sshll.u32 %s469_s7, 4  ;;  %s236_s26 = int_to_ptr.hbm [resolvable:$true] %s235_s26 }
  0x14   :  { %113 = vmatpush.msra.mxu0 %v92_v0  ;;  %v137_v2 = vld [vmem:[#allocation7 + $0x78] sm:$0xff]  ;;  %v90_v3 = vld [vmem:[#allocation5 + $0x8] sm:$0xff]  ;;  %v136_v4 = vld [vmem:[#allocation7 + $0x70] sm:$0xff] }
  0x15   :  { %142 = vmatpush.msra.mxu1 %v137_v2  ;;  %v135_v5 = vld [vmem:[#allocation7 + $0x68] sm:$0xff]  ;;  %v89_v6 = vld [vmem:[#allocation5] sm:$0xff]  ;;  %v88_v7 = vld [vmem:[#allocation2] sm:$0xff]  ;;  %v204_v58 = vand.u32 127, %v203_v53 }
  0x16   :  { %114 = vmatpush.msra.mxu0 %v91_v1  ;;  %v134_v8 = vld [vmem:[#allocation7 + $0x60] sm:$0xff]  ;;  %v133_v9 = vld [vmem:[#allocation7 + $0x58] sm:$0xff]  ;;  %v132_v10 = vld [vmem:[#allocation7 + $0x50] sm:$0xff] }
  0x17   :  { %143 = vmatpush.msra.mxu1 %v136_v4  ;;  %v131_v11 = vld [vmem:[#allocation7 + $0x48] sm:$0xff]  ;;  %v130_v12 = vld [vmem:[#allocation7 + $0x40] sm:$0xff]  ;;  %v129_v13 = vld [vmem:[#allocation7 + $0x38] sm:$0xff]  ;;  %vm225_vm5 = vcmp.ge.s32.totalorder %v204_v58, 16 }
  0x18   :  { %115 = vmatpush.msra.mxu0 %v90_v3  ;;  %v128_v14 = vld [vmem:[#allocation7 + $0x30] sm:$0xff]  ;;  %v127_v15 = vld [vmem:[#allocation7 + $0x28] sm:$0xff]  ;;  %v126_v16 = vld [vmem:[#allocation7 + $0x20] sm:$0xff] }
  0x19   :  { %144 = vmatpush.msra.mxu1 %v135_v5  ;;  %v125_v17 = vld [vmem:[#allocation7 + $0x18] sm:$0xff]  ;;  %v124_v18 = vld [vmem:[#allocation7 + $0x10] sm:$0xff]  ;;  %v123_v19 = vld [vmem:[#allocation7 + $0x8] sm:$0xff] }
  0x1a   :  { %116 = vmatpush.msra.mxu0 %v89_v6  ;;  %v122_v20 = vld [vmem:[#allocation7] sm:$0xff]  ;;  %v178_v21 = vld [vmem:[#allocation8 + $0x78] sm:$0xff]  ;;  %v177_v22 = vld [vmem:[#allocation8 + $0x70] sm:$0xff] }
  0x1b   :  { %247 = vmatmul.msk.f32.vlgmr.msra.gmra.mxu0 %vm97_vm0, %v88_v7  ;;  %145 = vmatpush.msra.mxu1 %v134_v8  ;;  %v176_v23 = vld [vmem:[#allocation8 + $0x68] sm:$0xff]  ;;  %v175_v24 = vld [vmem:[#allocation8 + $0x60] sm:$0xff]  ;;  %v174_v25 = vld [vmem:[#allocation8 + $0x58] sm:$0xff] }
  0x1c   :  { %183 = vmatpush.msra.mxu2 %v178_v21  ;;  %v173_v26 = vld [vmem:[#allocation8 + $0x50] sm:$0xff]  ;;  %v172_v27 = vld [vmem:[#allocation8 + $0x48] sm:$0xff]  ;;  %v171_v28 = vld [vmem:[#allocation8 + $0x40] sm:$0xff] }
  0x1d   :  { %146 = vmatpush.msra.mxu1 %v133_v9  ;;  %v170_v29 = vld [vmem:[#allocation8 + $0x38] sm:$0xff]  ;;  %v169_v30 = vld [vmem:[#allocation8 + $0x30] sm:$0xff]  ;;  %v168_v31 = vld [vmem:[#allocation8 + $0x28] sm:$0xff] }
  0x1e   :  { %184 = vmatpush.msra.mxu2 %v177_v22  ;;  %v167_v32 = vld [vmem:[#allocation8 + $0x20] sm:$0xff]  ;;  %v166_v33 = vld [vmem:[#allocation8 + $0x18] sm:$0xff]  ;;  %v165_v38 = vld [vmem:[#allocation8 + $0x10] sm:$0xff] }
  0x1f   :  { %147 = vmatpush.msra.mxu1 %v132_v10  ;;  %v256_v34 = vld [vmem:[%s466_s4] ss:$0 sm:$0xff]  ;;  %v164_v39 = vld [vmem:[#allocation8 + $0x8] sm:$0xff]  ;;  %v163_v40 = vld [vmem:[#allocation8] sm:$0xff] }
  0x20   :  { %185 = vmatpush.msra.mxu2 %v176_v23  ;;  %v257_v41 = vld [vmem:[%s467_s5] ss:$0 sm:$0xff]  ;;  %s397_s5 = smov [#allocation10]  }
  0x21   :  { %148 = vmatpush.msra.mxu1 %v131_v11  ;;  %v258_v45 = vld [vmem:[%s468_s6] ss:$0 sm:$0xff]  ;;  %s233_s6 = sshll.u32 %s397_s5, 4  ;;  %s234_s6 = int_to_ptr.vmem [resolvable:$true] %s233_s6 }
  0x22   :  { %186 = vmatpush.msra.mxu2 %v175_v24 }
  0x23   :  { %149 = vmatpush.msra.mxu1 %v130_v12 }
  0x24   :  { %187 = vmatpush.msra.mxu2 %v174_v25 }
  0x25   :  { %150 = vmatpush.msra.mxu1 %v129_v13 }
  0x26   :  { %188 = vmatpush.msra.mxu2 %v173_v26 }
  0x27   :  { %151 = vmatpush.msra.mxu1 %v128_v14 }
  0x28   :  { %189 = vmatpush.msra.mxu2 %v172_v27 }
  0x29   :  { %152 = vmatpush.msra.mxu1 %v127_v15 }
  0x2a   :  { %190 = vmatpush.msra.mxu2 %v171_v28 }
  0x2b   :  { %153 = vmatpush.msra.mxu1 %v126_v16 }
  0x2c   :  { %191 = vmatpush.msra.mxu2 %v170_v29 }
  0x2d   :  { %154 = vmatpush.msra.mxu1 %v125_v17 }
  0x2e   :  { %192 = vmatpush.msra.mxu2 %v169_v30 }
  0x2f   :  { %155 = vmatpush.msra.mxu1 %v124_v18 }
  0x30   :  { %193 = vmatpush.msra.mxu2 %v168_v31 }
  0x31   :  { %156 = vmatpush.msra.mxu1 %v123_v19 }
  0x32   :  { %194 = vmatpush.msra.mxu2 %v167_v32 }
  0x33   :  { %157 = vmatpush.msra.mxu1 %v122_v20 }
  0x34   :  { %195 = vmatpush.msra.mxu2 %v166_v33 }
  0x36   :  { %196 = vmatpush.msra.mxu2 %v165_v38 }
  0x38   :  { %197 = vmatpush.msra.mxu2 %v164_v39 }
  0x3a   :  { %198 = vmatpush.msra.mxu2 %v163_v40 }
  0x98   :  { %v118_v35 = vpop.f32.mrf.mxu0 }
  0x99   :  { %v119_v36 = vadd.f32 %v256_v34, %v118_v35 }
  0x9b   :  { %v121_v37 = vmax.f32 %v119_v36, 0.0 }
  0x9d   :  { %158 = vmatmul.f32.vlgmr.msra.gmra.mxu1 %v121_v37 }
 0x11a   :  { %v159_v42 = vpop.f32.mrf.mxu1 }
 0x11b   :  { %v160_v43 = vadd.f32 %v257_v41, %v159_v42 }
 0x11d   :  { %v162_v44 = vmax.f32 %v160_v43, 0.0 }
 0x11f   :  { %199 = vmatmul.f32.vlgmr.msra.gmra.mxu2 %v162_v44 }
 0x1a2   :  { %v200_v46 = vpop.f32.mrf.mxu2 }
 0x1a3   :  { %v201_v47 = vadd.f32 %v258_v45, %v200_v46 }
 0x1a5   :  { %v248_v48 = vmul.f32 -1.442695, %v201_v47 }
 0x1a7   :  { %259 = vpow2.f32 %v248_v48 }
 0x1ad   :  { %v260_v49 = vpop.eup %259 }
 0x1ae   :  { %v208_v50 = vadd.f32 1.0, %v260_v49 }
 0x1b0   :  { %261 = vrcp.f32 %v208_v50  ;;  %v220_v55 = vand.u32 2147483648, %v208_v50  ;;  %v218_v57 = vand.u32 2147483647, %v208_v50  ;;  %vm214_vm2 = vweird.f32 %v208_v50 }
 0x1b2   :  { %v221_v60 = vor.u32 1.1754944e-38, %v220_v55  ;;  %vm219_vm4 = vcmp.eq.f32.partialorder %v218_v57, 8.507059e+37 }
 0x1b6   :  { %v262_v51 = vpop.eup %261 }
 0x1b7   :  { %v210_v52 = vmul.f32 %v262_v51, %v208_v50  ;;  %vm215_vm1 = vweird.f32 %v262_v51 }
 0x1b8   :  { %vm216_vm3 = vmor %vm214_vm2, %vm215_vm1 }
 0x1b9   :  { %v211_v54 = vsub.f32 1.0, %v210_v52 }
 0x1bb   :  { %v212_v56 = vmul.f32 %v262_v51, %v211_v54 }
 0x1bd   :  { %v213_v59 = vadd.f32 %v262_v51, %v212_v56 }
 0x1bf   :  { %v217_v61 = vsel %vm216_vm3, %v262_v51, %v213_v59 }
 0x1c0   :  { %v222_v62 = vsel %vm219_vm4, %v221_v60, %v217_v61 }
 0x1c1   :  { %v224_v63 = vadd.f32 0.01, %v222_v62 }
 0x1c3   :  { %v226_v0 = vsel %vm225_vm5, %v224_v63, %v201_v47 }
 0x1c4   :  { %227 = vst [vmem:[#allocation10] sm:$0xff] %v226_v0 }
 0x1c5   :  { %238 = dma.vmem_to_hbm [thread:$0]  %s234_s6, 128, %s236_s26, [#allocation4]  }
 0x1c6   :  { %389 = dma.done.wait [#allocation4], 128  }
 0x1c7   :  { %390 = vsyncadd [#allocation4], 4294967168 }
 0x1c8   :  { %243 = vsyncpa [#allocation3], 1 }
 0x1c9   :  { %244 = vsyncpa [#allocation6], 1 }
 0x1ca   :  { %245 = vsyncpa [#allocation9], 1 }
 0x1cb   :  { %246 = vsyncpa [#allocation4], 1 }

</bundles_post_ra>
